<compile_context>
chip_gen: v6e
topology: v6e:2x2x1
jax: 0.10.0
libtpu: 0.0.40
codegen_flags: <defaults>
</compile_context>

<pallas_src>
import jax
import jax.numpy as jnp
from jax.experimental import pallas as pl
from jax.experimental.pallas import tpu as pltpu

LANE = 128


def _round_up(x, m):
    return ((x + m - 1) // m) * m


def _pad2(a, rows, cols):
    """Zero-pad a 2-D array up to (rows, cols)."""
    return jnp.pad(a, ((0, rows - a.shape[0]), (0, cols - a.shape[1])))


def trunk_deeponet_kernel(xt_ref, a_ref, c_ref,
                          wt1_ref, bt1_ref, wt2_ref, bt2_ref,
                          out_ref):
    """Per-NXY-tile trunk MLP + folded branch contraction (transposed layout).

    xt_ref : (C, TILE)   trunk coords tile, spatial on lanes (pipelined)
    a_ref  : (B, Hp)     A = zb @ wt3^T, precomputed & resident (f32 or bf16)
    c_ref  : (B, 1)      c = zb @ bt3^T, resident (f32)
    wt1_ref: (Hp, C)     trunk layer-1 weight^T (f32, VPU path)
    bt1_ref: (Hp, 1)     trunk layer-1 bias^T   (f32)
    wt2_ref: (Hp, Hp)    trunk layer-2 weight^T (f32 or bf16, MXU)
    bt2_ref: (Hp, 1)     trunk layer-2 bias^T   (f32)
    out_ref: (B, TILE)   output tile (lane-dense last dim)
    """
    f32 = jnp.float32
    xt = xt_ref[...]                        # (C, TILE)
    w1 = wt1_ref[...]                       # (Hp, C)

    # ---- trunk layer 1: K == coord_dim (tiny) -> VPU broadcast FMAs, no MXU.
    acc = bt1_ref[...]                      # (Hp, 1); broadcasts up on first add
    for c in range(w1.shape[1]):            # static, small (coord_dim)
        acc = acc + w1[:, c:c + 1] * xt[c:c + 1, :]
    ht = jnp.tanh(acc)                      # (Hp, TILE) f32

    # ---- trunk layer 2: (Hp,Hp)x(Hp,TILE) on the MXU, f32 accumulate ----
    w2 = wt2_ref[...]
    ht = jnp.tanh(jnp.dot(w2, ht.astype(w2.dtype),
                          preferred_element_type=f32) + bt2_ref[...])

    # ---- folded latent projection + branch contraction:
    #      out[b, n] = sum_h A[b, h] * ht[h, n] + c[b]
    a = a_ref[...]
    out_ref[...] = (jnp.dot(a, ht.astype(a.dtype), preferred_element_type=f32)
                    + c_ref[...])


def deeponet_forward(x_branch, x_trunk, params, *, tile_nxy=2048, use_bf16=True):
    """params = (wb1,bb1,wb2,bb2,wb3,bb3, wt1,bt1,wt2,bt2,wt3,bt3)."""
    (wb1, bb1, wb2, bb2, wb3, bb3,
     wt1, bt1, wt2, bt2, wt3, bt3) = params

    f32 = jnp.float32
    B, _ = x_branch.shape
    _, nx, ny, cdim = x_trunk.shape
    nxy = nx * ny
    H = wt2.shape[0]

    xb = x_branch.astype(f32)                                  # .float()
    xt = x_trunk[0].reshape(nxy, cdim).astype(f32)             # x_trunk[0,...]

    # ---- branch MLP computed ONCE in plain JAX (tiny), not per spatial tile ----
    zb = jnp.tanh(xb @ wb1 + bb1)
    zb = jnp.tanh(zb @ wb2 + bb2)
    zb = zb @ wb3 + bb3                                        # (B, P)

    # ---- fold the trunk latent projection into the branch side (wrapper-side,
    #      (B,P)-sized, free): removes one MXU matmul per tile in the kernel.
    A = zb @ wt3.T                                             # (B, H)
    c = zb @ bt3.T                                             # (B, 1)

    # ---- padding: H only to the sublane granule; lane padding only on NXY ----
    mxu_dtype = jnp.bfloat16 if use_bf16 else f32
    sub = 16 if use_bf16 else 8
    Hp = _round_up(H, sub)

    # Large tiles amortize per-step overhead (~0.35 us), but keep >= ~4 grid
    # steps when nxy is big enough so v7x's two TensorCores both get work.
    tile_cap = _round_up(max(1, -(-nxy // 4)), LANE)
    tile = min(_round_up(tile_nxy, LANE), tile_cap)            # multiple of 128
    nxy_p = _round_up(nxy, tile)

    # ---- transposed trunk layout: spatial dim on the lane axis everywhere ----
    xtT = _pad2(xt.T, cdim, nxy_p)                             # (cdim, nxy_p) f32
    wt1T = _pad2(wt1.T, Hp, cdim)                              # (Hp, cdim)    f32
    bt1T = _pad2(bt1.T, Hp, 1)                                 # (Hp, 1)       f32
    wt2T = _pad2(wt2.T, Hp, Hp).astype(mxu_dtype)              # (Hp, Hp)
    bt2T = _pad2(bt2.T, Hp, 1)                                 # (Hp, 1)       f32
    A_p = _pad2(A, B, Hp).astype(mxu_dtype)                    # (B, Hp)
    c_p = c.astype(f32)                                        # (B, 1)

    grid = (nxy_p // tile,)
    const = lambda i: (0, 0)   # resident operands: same block every grid step

    out_flat = pl.pallas_call(
        trunk_deeponet_kernel,
        out_shape=jax.ShapeDtypeStruct((B, nxy_p), f32),
        grid=grid,
        in_specs=[
            pl.BlockSpec((cdim, tile), lambda i: (0, i)),      # xt^T: tiled over NXY
            pl.BlockSpec((B, Hp), const),                      # A  (folded zb@wt3^T)
            pl.BlockSpec((B, 1), const),                       # c  (folded zb@bt3^T)
            pl.BlockSpec((Hp, cdim), const),                   # wt1^T
            pl.BlockSpec((Hp, 1), const),                      # bt1^T
            pl.BlockSpec((Hp, Hp), const),                     # wt2^T
            pl.BlockSpec((Hp, 1), const),                      # bt2^T
        ],
        out_specs=pl.BlockSpec((B, tile), lambda i: (0, i)),   # lane-dense tile
        compiler_params=pltpu.CompilerParams(
            dimension_semantics=("parallel",),                 # 2 TCs on v7x
            vmem_limit_bytes=32 * 1024 * 1024),                # safe on v5e/v6e/v7x
    )(xtT, A_p, c_p, wt1T, bt1T, wt2T, bt2T)

    # slice off NXY padding, then bxy -> unsqueeze(1) -> (B, 1, n_x, n_y)
    return out_flat[:, :nxy].reshape(B, 1, nx, ny)


def make_params(key, m_sensors, coord_dim, hidden, p):
    """Deterministic synthetic weights. Biases stored as (1, H)."""
    def linear(k, fan_in, fan_out):
        kw, kb = jax.random.split(k)
        scale = 1.0 / jnp.sqrt(jnp.float32(fan_in))
        w = jax.random.uniform(kw, (fan_in, fan_out), jnp.float32, -scale, scale)
        b = jax.random.uniform(kb, (1, fan_out), jnp.float32, -scale, scale)
        return w, b

    keys = jax.random.split(key, 6)
    wb1, bb1 = linear(keys[0], m_sensors, hidden)
    wb2, bb2 = linear(keys[1], hidden, hidden)
    wb3, bb3 = linear(keys[2], hidden, p)
    wt1, bt1 = linear(keys[3], coord_dim, hidden)
    wt2, bt2 = linear(keys[4], hidden, hidden)
    wt3, bt3 = linear(keys[5], hidden, p)
    return (wb1, bb1, wb2, bb2, wb3, bb3, wt1, bt1, wt2, bt2, wt3, bt3)


def reference_forward(x_branch, x_trunk, params):
    """Pure-JAX reference mirroring the PyTorch module."""
    (wb1, bb1, wb2, bb2, wb3, bb3, wt1, bt1, wt2, bt2, wt3, bt3) = params
    xb = x_branch.astype(jnp.float32)
    xt = x_trunk[0].astype(jnp.float32)          # (nx, ny, cdim)
    hb = jnp.tanh(xb @ wb1 + bb1)
    hb = jnp.tanh(hb @ wb2 + bb2)
    zb = hb @ wb3 + bb3                          # (B, P)
    ht = jnp.tanh(xt @ wt1 + bt1[0])
    ht = jnp.tanh(ht @ wt2 + bt2[0])
    zt = ht @ wt3 + bt3[0]                       # (nx, ny, P)
    out = jnp.einsum('bi,xyi->bxy', zb, zt)
    return out[:, None, :, :]


if __name__ == "__main__":
    # Small shapes: batch=2, 16 branch sensors, 16x16 spatial grid, 2-D coords,
    # hidden=32, latent p=16.  (nxy=256 -> tile=128 -> 2 grid steps.)
    B, M, NX, NY, CDIM, HIDDEN, P = 2, 16, 16, 16, 2, 32, 16

    key = jax.random.PRNGKey(0)
    k_xb, k_xt, k_params = jax.random.split(key, 3)

    x_branch = jax.random.normal(k_xb, (B, M), jnp.float32)
    x_trunk = jax.random.uniform(k_xt, (1, NX, NY, CDIM), jnp.float32)
    params = make_params(k_params, M, CDIM, HIDDEN, P)

    ref = reference_forward(x_branch, x_trunk, params)

    # f32 MXU path: tight check (math / folding correctness).
    out_f32 = jax.block_until_ready(
        deeponet_forward(x_branch, x_trunk, params, use_bf16=False))
    assert out_f32.shape == (B, 1, NX, NY), out_f32.shape
    assert jnp.allclose(out_f32, ref, atol=1e-4, rtol=1e-4), "f32 mismatch vs reference"

    # bf16 MXU path (perf path on v5e/v6e/v7x): f32 accumulation, looser tolerance.
    out_bf16 = jax.block_until_ready(
        deeponet_forward(x_branch, x_trunk, params, use_bf16=True))
    assert out_bf16.shape == (B, 1, NX, NY), out_bf16.shape
    assert jnp.allclose(out_bf16, ref, atol=5e-2, rtol=5e-2), "bf16 mismatch vs reference"

    print("KERNEL_OK")
</pallas_src>

<mosaic_0001>
module attributes {stable_mosaic.version = 11 : i64} {
  func.func @trunk_deeponet_kernel(%arg0: i32, %arg1: memref<2x128xf32, #tpu.memory_space<vmem>>, %arg2: memref<2x32xf32, #tpu.memory_space<vmem>>, %arg3: memref<2x1xf32, #tpu.memory_space<vmem>>, %arg4: memref<32x2xf32, #tpu.memory_space<vmem>>, %arg5: memref<32x1xf32, #tpu.memory_space<vmem>>, %arg6: memref<32x32xf32, #tpu.memory_space<vmem>>, %arg7: memref<32x1xf32, #tpu.memory_space<vmem>>, %arg8: memref<2x128xf32, #tpu.memory_space<vmem>>) attributes {dimension_semantics = [#tpu.dimension_semantics<parallel>], iteration_bounds = array<i64: 2>, scalar_prefetch = 0 : i64, scratch_operands = 0 : i64, tpu.core_type = #tpu.core_type<tc>, window_params = [{transform_indices = @transform_0, window_bounds = array<i64: 2, 128>}, {pipeline_mode = #tpu.pipeline_mode<synchronous>, transform_indices = @transform_1, window_bounds = array<i64: 2, 32>}, {pipeline_mode = #tpu.pipeline_mode<synchronous>, transform_indices = @transform_2, window_bounds = array<i64: 2, 1>}, {pipeline_mode = #tpu.pipeline_mode<synchronous>, transform_indices = @transform_3, window_bounds = array<i64: 32, 2>}, {pipeline_mode = #tpu.pipeline_mode<synchronous>, transform_indices = @transform_4, window_bounds = array<i64: 32, 1>}, {pipeline_mode = #tpu.pipeline_mode<synchronous>, transform_indices = @transform_5, window_bounds = array<i64: 32, 32>}, {pipeline_mode = #tpu.pipeline_mode<synchronous>, transform_indices = @transform_6, window_bounds = array<i64: 32, 1>}, {transform_indices = @transform_7, window_bounds = array<i64: 2, 128>}]} {
    %c0 = arith.constant 0 : index
    %c0_0 = arith.constant 0 : index
    %0 = vector.load %arg1[%c0, %c0_0] : memref<2x128xf32, #tpu.memory_space<vmem>>, vector<2x128xf32>
    %c0_1 = arith.constant 0 : index
    %c0_2 = arith.constant 0 : index
    %1 = vector.load %arg4[%c0_1, %c0_2] : memref<32x2xf32, #tpu.memory_space<vmem>>, vector<32x2xf32>
    %c0_3 = arith.constant 0 : index
    %c0_4 = arith.constant 0 : index
    %2 = vector.load %arg5[%c0_3, %c0_4] : memref<32x1xf32, #tpu.memory_space<vmem>>, vector<32x1xf32>
    %3 = vector.extract_strided_slice %1 {offsets = [0, 0], sizes = [32, 1], strides = [1, 1]} : vector<32x2xf32> to vector<32x1xf32>
    %4 = vector.extract_strided_slice %0 {offsets = [0, 0], sizes = [1, 128], strides = [1, 1]} : vector<2x128xf32> to vector<1x128xf32>
    %5 = vector.broadcast %3 : vector<32x1xf32> to vector<32x128xf32>
    %6 = vector.broadcast %4 : vector<1x128xf32> to vector<32x128xf32>
    %7 = arith.mulf %5, %6 : vector<32x128xf32>
    %8 = vector.broadcast %2 : vector<32x1xf32> to vector<32x128xf32>
    %9 = arith.addf %8, %7 : vector<32x128xf32>
    %10 = vector.extract_strided_slice %1 {offsets = [0, 1], sizes = [32, 1], strides = [1, 1]} : vector<32x2xf32> to vector<32x1xf32>
    %11 = vector.extract_strided_slice %0 {offsets = [1, 0], sizes = [1, 128], strides = [1, 1]} : vector<2x128xf32> to vector<1x128xf32>
    %12 = vector.broadcast %10 : vector<32x1xf32> to vector<32x128xf32>
    %13 = vector.broadcast %11 : vector<1x128xf32> to vector<32x128xf32>
    %14 = arith.mulf %12, %13 : vector<32x128xf32>
    %15 = arith.addf %9, %14 : vector<32x128xf32>
    %16 = math.tanh %15 : vector<32x128xf32>
    %c0_5 = arith.constant 0 : index
    %c0_6 = arith.constant 0 : index
    %17 = vector.load %arg6[%c0_5, %c0_6] : memref<32x32xf32, #tpu.memory_space<vmem>>, vector<32x32xf32>
    %cst = arith.constant dense<0.000000e+00> : vector<32x128xf32>
    %18 = tpu.matmul %17, %16, %cst {dimension_numbers = #tpu.dot_dimension_numbers<[1], [0], [0], [1], [0, 0, 1, 1], [], []>} : vector<32x32xf32>, vector<32x128xf32>, vector<32x128xf32> -> vector<32x128xf32>
    %c0_7 = arith.constant 0 : index
    %c0_8 = arith.constant 0 : index
    %19 = vector.load %arg7[%c0_7, %c0_8] : memref<32x1xf32, #tpu.memory_space<vmem>>, vector<32x1xf32>
    %20 = vector.broadcast %19 : vector<32x1xf32> to vector<32x128xf32>
    %21 = arith.addf %18, %20 : vector<32x128xf32>
    %22 = math.tanh %21 : vector<32x128xf32>
    %c0_9 = arith.constant 0 : index
    %c0_10 = arith.constant 0 : index
    %23 = vector.load %arg2[%c0_9, %c0_10] : memref<2x32xf32, #tpu.memory_space<vmem>>, vector<2x32xf32>
    %cst_11 = arith.constant dense<0.000000e+00> : vector<2x128xf32>
    %24 = tpu.matmul %23, %22, %cst_11 {dimension_numbers = #tpu.dot_dimension_numbers<[1], [0], [0], [1], [0, 0, 1, 1], [], []>} : vector<2x32xf32>, vector<32x128xf32>, vector<2x128xf32> -> vector<2x128xf32>
    %c0_12 = arith.constant 0 : index
    %c0_13 = arith.constant 0 : index
    %25 = vector.load %arg3[%c0_12, %c0_13] : memref<2x1xf32, #tpu.memory_space<vmem>>, vector<2x1xf32>
    %26 = vector.broadcast %25 : vector<2x1xf32> to vector<2x128xf32>
    %27 = arith.addf %24, %26 : vector<2x128xf32>
    %c0_14 = arith.constant 0 : index
    %c0_15 = arith.constant 0 : index
    %28 = vector.load %arg8[%c0_14, %c0_15] : memref<2x128xf32, #tpu.memory_space<vmem>>, vector<2x128xf32>
    tpu.vector_store %arg8[%c0_14, %c0_15], %27 {strides = array<i32>} : memref<2x128xf32, #tpu.memory_space<vmem>>, vector<2x128xf32>,
    return
  }
  func.func @transform_0(%arg0: i32) -> (i32, i32) {
    %c0_i32 = arith.constant 0 : i32
    %c0_i32_0 = arith.constant 0 : i32
    return %c0_i32, %arg0 : i32, i32
  }
  func.func @transform_1(%arg0: i32) -> (i32, i32) {
    %c0_i32 = arith.constant 0 : i32
    %c0_i32_0 = arith.constant 0 : i32
    %c0_i32_1 = arith.constant 0 : i32
    return %c0_i32, %c0_i32_0 : i32, i32
  }
  func.func @transform_2(%arg0: i32) -> (i32, i32) {
    %c0_i32 = arith.constant 0 : i32
    %c0_i32_0 = arith.constant 0 : i32
    %c0_i32_1 = arith.constant 0 : i32
    return %c0_i32, %c0_i32_0 : i32, i32
  }
  func.func @transform_3(%arg0: i32) -> (i32, i32) {
    %c0_i32 = arith.constant 0 : i32
    %c0_i32_0 = arith.constant 0 : i32
    %c0_i32_1 = arith.constant 0 : i32
    return %c0_i32, %c0_i32_0 : i32, i32
  }
  func.func @transform_4(%arg0: i32) -> (i32, i32) {
    %c0_i32 = arith.constant 0 : i32
    %c0_i32_0 = arith.constant 0 : i32
    %c0_i32_1 = arith.constant 0 : i32
    return %c0_i32, %c0_i32_0 : i32, i32
  }
  func.func @transform_5(%arg0: i32) -> (i32, i32) {
    %c0_i32 = arith.constant 0 : i32
    %c0_i32_0 = arith.constant 0 : i32
    %c0_i32_1 = arith.constant 0 : i32
    return %c0_i32, %c0_i32_0 : i32, i32
  }
  func.func @transform_6(%arg0: i32) -> (i32, i32) {
    %c0_i32 = arith.constant 0 : i32
    %c0_i32_0 = arith.constant 0 : i32
    %c0_i32_1 = arith.constant 0 : i32
    return %c0_i32, %c0_i32_0 : i32, i32
  }
  func.func @transform_7(%arg0: i32) -> (i32, i32) {
    %c0_i32 = arith.constant 0 : i32
    %c0_i32_0 = arith.constant 0 : i32
    return %c0_i32, %arg0 : i32, i32
  }
}

</mosaic_0001>

<bundles_post_ra>
// kernel: tpu_custom_call.1
= control target key start
LH: loop header
LB: loop body
LE: loop exit
PB: predicated region body
PF: predicated region fallthrough
CT: control target
= control target key end

     0   :  { %12 = vsyncpa [#allocation3], 0  ;;  %s1028_s0 = inlined_call_operand.vmem [shape: f32[2,256], index: 0, kind: input, shape index: {}]   ;;  %s1029_s1 = inlined_call_operand.vmem [shape: f32[2,32], index: 1, kind: input, shape index: {}]   ;;  %s1030_s2 = inlined_call_operand.vmem [shape: f32[2,1], index: 2, kind: input, shape index: {}]   ;;  %s1031_s3 = inlined_call_operand.vmem [shape: f32[32,2], index: 3, kind: input, shape index: {}]   ;;  %s1032_s4 = inlined_call_operand.vmem [shape: f32[32,1], index: 4, kind: input, shape index: {}]   ;;  %s1033_s5 = inlined_call_operand.vmem [shape: f32[32,32], index: 5, kind: input, shape index: {}]   ;;  %s1034_s6 = inlined_call_operand.vmem [shape: f32[32,1], index: 6, kind: input, shape index: {}]   ;;  %s1035_s7 = inlined_call_operand.hbm [shape: f32[2,256], index: 7, kind: output, shape index: {}]  }
   0x1   :  { %14 = vsyncpa [#allocation3 + $0x1], 0  ;;  %s876_s24 = smov 0   ;;  %s878_s25 = smov 0  }
   0x2   :  { %s880_s26 = smov 0   ;;  %s882_s27 = smov 0  }
   0x3 LB: > { %s897_s28 = sadd.s32 4294967295, %s829_s27   ;;  %s651_s29 = sadd.s32 4294967294, %s829_s27   ;;  %s829_s27 = sphi %s882_s27, %s1041_s27   ;;  %s825_s26 = sphi %s880_s26, %s1040_s26   ;;  %s821_s25 = sphi %s878_s25, %s1039_s25   ;;  %s817_s24 = sphi %s876_s24, %s1038_s24  }
   0x4   : > { %s901_s30 = sadd.s32 1, %s829_s27   ;;  %s179_s8 = sadd.s32 1, %s825_s26 }
   0x5   : > { %s176_s9 = ssub.s32 %s829_s27, %s901_s30  ;;  %p189_p0 = scmp.ne.s32.totalorder %s825_s26, %s821_s25 }
   0x6   : > { %p177_p1 = scmp.eq.s32.totalorder %s176_s9, 0  ;;  %p190_p2 = scmp.eq.s32.totalorder %s897_s28, 1 }
   0x7   : > { %p195_p3 = scmp.ne.s32.totalorder %s821_s25, %s817_s24  ;;  %p196_p4 = scmp.eq.s32.totalorder %s651_s29, 1 }
   0x8   : > { %s912_s10 = scalar_select %p177_p1, %s825_s26, %s179_s8  }
   0x9   : > { %p914_p5 = por %p190_p2, %p189_p0  ;;  %p918_p6 = por %p196_p4, %p195_p3 }
   0xa   : > { %p654_p7 = scmp.ge.s32.totalorder %s829_s27, 1  ;;  %p239_p8 = scmp.lt.s32.totalorder %s829_s27, 3 }
   0xc   : > { %p240_p9 = pnand %p654_p7, %p239_p8 }
   0xd   : > { %p270_p10 = scmp.lt.s32.totalorder (!%p240_p9), %s897_s28, 1  ;;  %s267_s9 = sand.u32 (!%p240_p9), 1, %s821_s25  }
   0xe   : > { %243 = sbr.rel (%p240_p9) target bundleno = 615 (0x267), region = 48  ;;  %s579_s20 = scalar_lea.sflag (!%p240_p9), [#allocation3], %s267_s9 }
  0x13   : > { %v282_v0 = vld [vmem:[%s1032_s4 + $0x18] sm:$0xff]  ;;  %v831_v2 = vmov 0   ;;  %v277_v3 = vld [vmem:[%s1031_s3 + $0x10] sm:$0xff]  ;;  %v832_v4 = vmov 1   ;;  %v276_v5 = vld [vmem:[%s1031_s3 + $0x8] sm:$0xff]  ;;  %vm395_vm0 = vcmask 261120   ;;  %v303_v16 = vlaneseq }
  0x14   : > { %v278_v1 = vld [vmem:[%s1031_s3 + $0x18] sm:$0xff]  ;;  %748 = vset.pattern.permute.xlu1 %v831_v2  ;;  %747 = vset.pattern.permute.xlu0 %v831_v2  ;;  %v281_v6 = vld [vmem:[%s1032_s4 + $0x10] sm:$0xff]  ;;  %v275_v7 = vld [vmem:[%s1031_s3] sm:$0xff]  ;;  %s271_s13 = scalar_select %p270_p10, %s897_s28, 1  ;;  %v833_v58 = vmov 0.0   ;;  %vm834_vm1 = vmmov 0  }
  0x15   : > { %328 = vperm.xlu1 %748, %v282_v0   ;;  %300 = vperm.xlu0 %747, %v278_v1   ;;  %v280_v8 = vld [vmem:[%s1032_s4 + $0x8] sm:$0xff]  ;;  %v279_v9 = vld [vmem:[%s1032_s4] sm:$0xff]  ;;  %v374_v10 = vld [vmem:[%s1034_s6 + $0x18] sm:$0xff]  ;;  %v304_v17 = vshrl.u32 %v303_v16, 7 }
  0x16   : > { %v372_v11 = vld [vmem:[%s1034_s6 + $0x8] sm:$0xff]  ;;  %v371_v12 = vld [vmem:[%s1034_s6] sm:$0xff]  ;;  %v373_v14 = vld [vmem:[%s1034_s6 + $0x10] sm:$0xff]  ;;  %s656_s14 = sshll.u32 %s271_s13, 1  ;;  %693 = vmatprep.subr.mxu1 %v833_v58  ;;  %701 = vmatprep.mubr.msk.f32.mxu1 %vm834_vm1, %v833_v58  ;;  %s655_s13 = sshll.u32 %s267_s9, 1 }
  0x17   : > { %v367_v13 = vld [vmem:[%s1033_s5] sm:$0xff]  ;;  %s273_s17 = scalar_lea.vmem %s1028_s0, %s656_s14  ;;  %v305_v18 = vsub.s32 0, %v304_v17  ;;  %v353_v21 = vsub.s32 1, %v304_v17  ;;  %v368_v55 = vld [vmem:[%s1033_s5 + $0x8] sm:$0xff]  ;;  %v369_v56 = vld [vmem:[%s1033_s5 + $0x10] sm:$0xff]  ;;  %s663_s14 = sshll.u32 %s897_s28, 5 }
  0x18   : > { %687 = vmatprep.mubr.msk.f32.mxu0 %vm395_vm0, %v367_v13  ;;  %v498_v15 = vld [vmem:[%s1030_s2] sm:$0x3]  ;;  %v370_v57 = vld [vmem:[%s1033_s5 + $0x18] sm:$0xff]  ;;  %s269_s15 = scalar_lea.vmem [#allocation2], %s655_s13  ;;  %s993_s19 = scalar_lea.hbm %s1035_s7, %s663_s14 }
  0x19   : > { %749 = vset.pattern.permute.xlu1 %v832_v4  ;;  %295 = vperm.xlu0 %747, %v277_v3   ;;  %v274_v19 = vld [vmem:[%s273_s17] sm:$0x3]  ;;  %s592_s16 = sshll.u32 %s269_s15, 4  ;;  %s835_s28 = smov [#allocation2]   ;;  %s593_s16 = int_to_ptr.vmem [resolvable:$true] %s592_s16 }
  0x1a   : > { %348 = vperm.xlu1 %749, %v278_v1   ;;  %v306_v20 = vrot.slane %v274_v19, %v305_v18  ;;  %v354_v25 = vrot.slane %v274_v19, %v353_v21  ;;  %s769_s21 = scalar_lea.vmem %s593_s16, 32  ;;  %s773_s22 = sshll.u32 %s835_s28, 4  ;;  %s774_s22 = int_to_ptr.vmem [resolvable:$false] %s773_s22 }
  0x1b   : > { %p770_p11 = scmp.ne.s32.totalorder %s593_s16, %s769_s21  ;;  %s775_s23 = scalar_lea.vmem %s774_s22, 64 }
  0x1c   : > { %p776_p0 = scmp.lt.s32.totalorder %s593_s16, %s774_s22  ;;  %p777_p1 = scmp.lt.s32.totalorder %s775_s23, %s769_s21 }
  0x1d   : > { %290 = vperm.xlu0 %747, %v276_v5   ;;  %p771_p12 = pnand %p770_p11, %p914_p5 }
  0x1e   : > { %750 = vset.pattern.permute.xlu1 %v831_v2  ;;  %p778_p2 = por %p777_p1, %p776_p0 }
  0x1f   : > { %323 = vperm.xlu1 %750, %v281_v6   ;;  %p772_p13 = pneg %p771_p12 }
  0x21   : > { %751 = vset.pattern.permute.xlu0 %v832_v4  ;;  %p779_p3 = pnand %p778_p2, %p772_p13 }
  0x22   : > { %344 = vperm.xlu0 %751, %v277_v3  }
  0x23   : > { %285 = vperm.xlu1 %750, %v275_v7  }
  0x26   : > { %340 = vperm.xlu0 %751, %v276_v5  }
  0x27   : > { %318 = vperm.xlu1 %750, %v280_v8  }
  0x2a   : > { %336 = vperm.xlu0 %751, %v275_v7  }
  0x2b   : > { %313 = vperm.xlu1 %750, %v279_v9  }
  0x2e   : > { %752 = vset.pattern.permute.xlu0 %v831_v2 }
  0x2f   : > { %392 = vperm.xlu1 %750, %v374_v10   ;;  %387 = vperm.xlu0 %752, %v373_v14   ;;  %v497_v10 = vld [vmem:[%s1029_s1] sm:$0x3] }
  0x33   : > { %382 = vperm.xlu1 %750, %v372_v11   ;;  %501 = vperm.xlu0 %752, %v498_v15  }
  0x37   : > { %377 = vperm.xlu1 %750, %v371_v12  }
  0x90   : > { %v329_v22 = vpop.permute.xlu1 %328  ;;  %v301_v23 = vpop.permute.xlu0 %300 }
  0x91   : > { %v310_v24 = vmul.f32 %v306_v20, %v301_v23 }
  0x93   : > { %v334_v28 = vadd.f32 %v329_v22, %v310_v24 }
  0x94   : > { %v296_v26 = vpop.permute.xlu0 %295 }
  0x95   : > { %v349_v27 = vpop.permute.xlu1 %348  ;;  %v309_v33 = vmul.f32 %v306_v20, %v296_v26 }
  0x96   : > { %v358_v29 = vmul.f32 %v354_v25, %v349_v27 }
  0x98   : > { %v362_v30 = vadd.f32 %v358_v29, %v334_v28  ;;  %v291_v31 = vpop.permute.xlu0 %290 }
  0x99   : > { %v308_v39 = vmul.f32 %v306_v20, %v291_v31 }
  0x9a   : > { %753 = vtanh.f32 %v362_v30  ;;  %v324_v32 = vpop.permute.xlu1 %323 }
  0x9b   : > { %v333_v35 = vadd.f32 %v324_v32, %v309_v33 }
  0x9d   : > { %v345_v34 = vpop.permute.xlu0 %344 }
  0x9e   : > { %v357_v36 = vmul.f32 %v354_v25, %v345_v34  ;;  %v286_v37 = vpop.permute.xlu1 %285 }
  0x9f   : > { %v307_v44 = vmul.f32 %v306_v20, %v286_v37 }
  0xa0   : > { %v361_v38 = vadd.f32 %v357_v36, %v333_v35 }
  0xa1   : > { %v341_v40 = vpop.permute.xlu0 %340 }
  0xa2   : > { %755 = vtanh.f32 %v361_v38  ;;  %v356_v41 = vmul.f32 %v354_v25, %v341_v40  ;;  %v319_v42 = vpop.permute.xlu1 %318 }
  0xa3   : > { %v332_v43 = vadd.f32 %v319_v42, %v308_v39 }
  0xa5   : > { %v360_v45 = vadd.f32 %v356_v41, %v332_v43  ;;  %v337_v46 = vpop.permute.xlu0 %336 }
  0xa6   : > { %v355_v47 = vmul.f32 %v354_v25, %v337_v46  ;;  %v314_v48 = vpop.permute.xlu1 %313 }
  0xa7   : > { %v754_v49 = vpop.eup %753  ;;  %757 = vtanh.f32 %v360_v45  ;;  %v331_v50 = vadd.f32 %v314_v48, %v307_v44 }
  0xa8   : > { %679 = vmatprep.subr.mxu0 %v754_v49 }
  0xa9   : > { %v359_v51 = vadd.f32 %v355_v47, %v331_v50  ;;  %680 = vmatpush3.msra.mxu0 %v754_v49 }
  0xaa   : > { %v393_v59 = vpop.permute.xlu1 %392  ;;  %v388_v1 = vpop.permute.xlu0 %387 }
  0xab   : > { %759 = vtanh.f32 %v359_v51 }
  0xae   : > { %v383_v61 = vpop.permute.xlu1 %382  ;;  %v502_v12 = vpop.permute.xlu0 %501 }
  0xaf   : > { %v756_v52 = vpop.eup %755 }
  0xb0   : > { %681 = vmatprep.subr.mxu0 %v756_v52 }
  0xb1   : > { %682 = vmatpush3.msra.mxu0 %v756_v52 }
  0xb2   : > { %v378_v5 = vpop.permute.xlu1 %377 }
  0xb4   : > { %v758_v53 = vpop.eup %757 }
  0xb5   : > { %683 = vmatprep.subr.mxu0 %v758_v53 }
  0xb6   : > { %684 = vmatpush3.msra.mxu0 %v758_v53 }
  0xb8   : > { %v760_v54 = vpop.eup %759 }
  0xb9   : > { %685 = vmatprep.subr.mxu0 %v760_v54 }
  0xba   : > { %686 = vmatpush3.msra.mxu0 %v760_v54 }
  0xbb   : > { %688 = vmatmul.mubr.msk.f32.vlgmr.msra.gmra.mxu0 %vm395_vm0, %v368_v55 }
  0xbc   : > { %690 = vmatprep.mubr.msk.f32.mxu0 %vm395_vm0, %v369_v56 }
  0xbf   : > { %691 = vmatmul.mubr.msk.f32.gmra.mxu0 %vm395_vm0, %v370_v57 }
 0x17b   : > { %v689_v60 = vpop.f32.mrf.mxu0 }
 0x17c   : > { %v480_v3 = vadd.f32 %v689_v60, %v383_v61 }
 0x17d   : > { %v474_v62 = vpop.f32.mrf.mxu0 }
 0x17e   : > { %v475_v6 = vadd.f32 %v474_v62, %v378_v5 }
 0x17f   : > { %v692_v63 = vpop.f32.mrf.mxu0 }
 0x180   : > { %v490_v0 = vadd.f32 %v692_v63, %v393_v59 }
 0x181   : > { %v484_v2 = vpop.f32.mrf.mxu0 }
 0x182   : > { %761 = vtanh.f32 %v490_v0  ;;  %v485_v4 = vadd.f32 %v484_v2, %v388_v1 }
 0x184   : > { %763 = vtanh.f32 %v485_v4 }
 0x185   : > { %765 = vtanh.f32 %v480_v3 }
 0x186   : > { %767 = vtanh.f32 %v475_v6 }
 0x18f   : > { %v762_v7 = vpop.eup %761 }
 0x190   : > { %694 = vmatpush3.msra.mxu1 %v762_v7 }
 0x191   : > { %v764_v8 = vpop.eup %763  ;;  %695 = vmatprep.subr.mxu1 %v833_v58 }
 0x192   : > { %696 = vmatpush3.msra.mxu1 %v764_v8  ;;  %v766_v9 = vpop.eup %765 }
 0x193   : > { %697 = vmatprep.subr.mxu1 %v833_v58  ;;  %v768_v11 = vpop.eup %767 }
 0x194   : > { %698 = vmatpush3.msra.mxu1 %v766_v9 }
 0x195   : > { %699 = vmatprep.subr.mxu1 %v833_v58 }
 0x196   : > { %700 = vmatpush3.msra.mxu1 %v768_v11 }
 0x197   : > { %702 = vmatmul.mubr.msk.f32.vlgmr.msra.gmra.mxu1 %vm395_vm0, %v497_v10 }
 0x257   : > { %v573_v13 = vpop.f32.mrf.mxu1 }
 0x258   : > { %v574_v14 = vadd.f32 %v573_v13, %v502_v12 }
 0x259   : > { %v703_v15 = vpop.f32.mrf.mxu1 }
 0x25a   : > { %577 = vst [vmem:[%s269_s15] sm:$0x3] %v574_v14 }
 0x25b   : > { %782 = shalt.err (!%p779_p3)
}
 0x25c   : > { %s783_s29 = scalar_lea.hbm %s993_s19, 32  ;;  %s787_s13 = scalar_lea.hbm %s1035_s7, 64 }
 0x25d   : > { %p784_p4 = scmp.ne.s32.totalorder %s993_s19, %s783_s29  ;;  %p788_p9 = scmp.lt.s32.totalorder %s993_s19, %s1035_s7 }
 0x25e   : > { %p789_p10 = scmp.lt.s32.totalorder %s787_s13, %s783_s29 }
 0x25f   : > { %p785_p7 = pnand %p784_p4, %p914_p5 }
 0x260   : > { %p790_p11 = por %p789_p10, %p788_p9 }
 0x261   : > { %p786_p8 = pneg %p785_p7 }
 0x263   : > { %p791_p12 = pnand %p790_p11, %p786_p8 }
 0x265   : > { %794 = shalt.err (!%p791_p12)
}
 0x266   : > { %704 = dma.vmem_to_hbm [thread:$0]  (%p914_p5), %s593_s16, 32, %s993_s19, %s579_s20  }
 0x267 PF: > { %p710_p13 = scmp.ge.s32.totalorder %s829_s27, 2  ;;  %s604_s17 = sand.u32 1, %s817_s24  }
 0x268   : > { %s605_s18 = scalar_lea.sflag [#allocation3], %s604_s17 }
 0x269   : > { %p707_p0 = pnand %p710_p13, %p918_p6 }
 0x26b   : > { %p708_p1 = pneg %p707_p0 }
 0x26d   : > { %812 = dma.done.wait (%p708_p1), %s605_s18, 32  }
 0x26e   : > { %814 = vsyncadd (%p708_p1), %s605_s18, 4294967264  ;;  %p17_p2 = scmp.ge.s32.totalorder %s901_s30, 4   ;;  %s1038_s24 = smov %s821_s25 }
 0x26f   : > { %s1039_s25 = smov %s825_s26  ;;  %s1040_s26 = smov %s912_s10 }
 0x270   : > { %s1041_s27 = smov %s901_s30  ;;  %19 = sbr.rel (!%p17_p2) target bundleno = 3 (0x3), region = 83 }
 0x275   :  { %610 = vsyncpa [#allocation3], 1 }
 0x276   :  { %612 = vsyncpa [#allocation3 + $0x1], 1 }

</bundles_post_ra>
